<compile_context>
chip_gen: v7x
topology: tpu7x:2x2x1
jax: 0.10.0
libtpu: 0.0.40
codegen_flags: <defaults>
</compile_context>

<pallas_src>
import functools

import numpy as np
import jax
import jax.numpy as jnp
from jax import lax
from jax.experimental import pallas as pl
from jax.experimental.pallas import tpu as pltpu


# ----------------------------------------------------------------------------
# Host-side index construction (mirrors NPairLoss.get_n_pairs, deterministic
# via a seeded legacy RandomState so np.random.choice semantics match).
# ----------------------------------------------------------------------------
def get_n_pairs(labels, seed=0):
    labels = np.asarray(labels)
    rng = np.random.RandomState(seed)
    n_pairs = []
    for label in sorted(set(labels.tolist())):
        label_indices = np.where(labels == label)[0]
        if len(label_indices) < 2:
            continue
        anchor, positive = rng.choice(label_indices, 2, replace=False)
        n_pairs.append([int(anchor), int(positive)])
    n_pairs = np.array(n_pairs, dtype=np.int32)
    n_negatives = []
    for i in range(len(n_pairs)):
        negative = np.concatenate([n_pairs[:i, 1], n_pairs[i + 1:, 1]])
        n_negatives.append(negative)
    n_negatives = np.array(n_negatives, dtype=np.int32)
    return n_pairs, n_negatives


# ----------------------------------------------------------------------------
# Pallas kernel: n-pair loss + angular loss + L2 regularization
#   inputs:  anchors (n, D), positives (n, D)   [D on the lane axis]
#   output:  scalar loss as (1, 1) f32
# ----------------------------------------------------------------------------
_DN = (((1,), (1,)), ((), ()))  # contract last dim of both operands


def _npair_angular_kernel(a_ref, p_ref, out_ref, *,
                          l2_reg, angle_bound, lambda_ang):
    a = a_ref[...]                                   # (n, D)
    p = p_ref[...]                                   # (n, D)
    n = a.shape[0]

    # ---- MXU contractions with f32 accumulation ----
    # S[i, j] = a_i . p_j
    s = lax.dot_general(a, p, _DN, preferred_element_type=jnp.float32)
    # T[i, j] = (a_i + p_i) . p_j
    t_mat = lax.dot_general(a + p, p, _DN, preferred_element_type=jnp.float32)

    row = lax.broadcasted_iota(jnp.int32, (n, n), 0)
    col = lax.broadcasted_iota(jnp.int32, (n, n), 1)
    is_diag = row == col
    off_diag = row != col
    neg_inf = jnp.float32(-jnp.inf)

    # a_i . p_i  == diagonal of S
    ap_dot = jnp.sum(jnp.where(is_diag, s, 0.0), axis=1, keepdims=True)  # (n, 1)

    # ---- n-pair loss:  mean_i log(1 + sum_{j != i} exp(a_i.(p_j - p_i))) ----
    x_np = s - ap_dot                                                    # (n, n)
    e_np = jnp.exp(jnp.where(off_diag, x_np, neg_inf))  # masked arg -> exp(-inf)=0
    sum_np = jnp.sum(e_np, axis=1, keepdims=True)                        # (n, 1)
    n_pair = jnp.mean(jnp.log(1.0 + sum_np))            # matches torch.log(1 + x)

    # ---- angular loss (max-stabilized, negatives are rows j != i) ----
    x_ang = 4.0 * angle_bound * t_mat - 2.0 * (1.0 + angle_bound) * ap_dot
    x_ang_m = jnp.where(off_diag, x_ang, neg_inf)
    # t is detached (no-grad) in the PyTorch reference; forward is identical.
    t = jnp.max(x_ang_m, axis=1, keepdims=True)                          # (n, 1)
    ex = jnp.exp(x_ang_m - t)                            # diag -> exp(-inf) = 0
    lg = jnp.log(jnp.exp(-t) + jnp.sum(ex, axis=1, keepdims=True))       # (n, 1)
    angular = jnp.mean(t + lg)

    # ---- L2 regularization: sum(a^2 + p^2) / n  (f32 accumulation) ----
    a32 = a.astype(jnp.float32)
    p32 = p.astype(jnp.float32)
    l2 = jnp.sum(a32 * a32 + p32 * p32) / n

    loss = (n_pair + lambda_ang * angular) / (1.0 + lambda_ang) + l2_reg * l2
    out_ref[...] = jnp.reshape(loss, (1, 1)).astype(out_ref.dtype)


def _loss_pallas(anchors, positives, *, l2_reg, angle_bound, lambda_ang):
    kernel = functools.partial(
        _npair_angular_kernel,
        l2_reg=float(l2_reg),
        angle_bound=float(angle_bound),
        lambda_ang=float(lambda_ang),
    )
    out = pl.pallas_call(
        kernel,
        out_shape=jax.ShapeDtypeStruct((1, 1), jnp.float32),
        in_specs=[
            pl.BlockSpec(memory_space=pltpu.MemorySpace.VMEM),
            pl.BlockSpec(memory_space=pltpu.MemorySpace.VMEM),
        ],
        out_specs=pl.BlockSpec(memory_space=pltpu.MemorySpace.VMEM),
    )(anchors, positives)
    return out[0, 0]


# ----------------------------------------------------------------------------
# Module-equivalent wrapper: NPairAngularLoss.forward(embeddings, target)
# ----------------------------------------------------------------------------
def npair_angular_loss_forward(embeddings, target,
                               l2_reg=0.02, angle_bound=1.0, lambda_ang=2):
    n_pairs, _ = get_n_pairs(target)                 # host-side (numpy)
    anchors = embeddings[n_pairs[:, 0]]              # (n, D) small device gather
    positives = embeddings[n_pairs[:, 1]]            # (n, D)
    # The (n, n-1, D) negatives tensor is intentionally NOT built: the kernel
    # reconstructs it implicitly from the positives matrix (rows j != i).
    loss = _loss_pallas(anchors, positives,
                        l2_reg=l2_reg, angle_bound=angle_bound,
                        lambda_ang=lambda_ang)
    return (loss, 0, 0, 0)


# ----------------------------------------------------------------------------
# Pure-JAX reference (original 3-D negatives formulation) for correctness.
# ----------------------------------------------------------------------------
def _reference_loss(anchors, positives, negatives,
                    l2_reg=0.02, angle_bound=1.0, lambda_ang=2):
    a = anchors[:, None, :]
    p = positives[:, None, :]
    # n-pair
    x = jnp.matmul(a, jnp.swapaxes(negatives - p, 1, 2))
    x = jnp.sum(jnp.exp(x), axis=2)
    n_pair = jnp.mean(jnp.log(1.0 + x))
    # angular
    x = (4.0 * angle_bound * jnp.matmul(a + p, jnp.swapaxes(negatives, 1, 2))
         - 2.0 * (1.0 + angle_bound) * jnp.matmul(a, jnp.swapaxes(p, 1, 2)))
    t = jnp.max(x, axis=2)
    x = jnp.exp(x - t[:, None])
    x = jnp.log(jnp.exp(-t) + jnp.sum(x, axis=2))
    angular = jnp.mean(t + x)
    l2 = jnp.sum(anchors ** 2 + positives ** 2) / anchors.shape[0]
    return (n_pair + lambda_ang * angular) / (1 + lambda_ang) + l2_reg * l2


if __name__ == "__main__":
    key = jax.random.PRNGKey(0)
    batch, dim = 8, 32
    embeddings = jax.random.normal(key, (batch, dim), dtype=jnp.float32) * 0.5
    # 4 classes x 2 samples -> n = 4 pairs, 3 negatives each
    target = np.array([0, 0, 1, 1, 2, 2, 3, 3], dtype=np.int64)

    loss, _, _, _ = npair_angular_loss_forward(embeddings, target)
    loss = jax.block_until_ready(loss)

    # Correctness: kernel (A.P^T reformulation) vs. pure-JAX reference that
    # materializes the original (n, n-1, D) negatives tensor.
    n_pairs, n_negatives = get_n_pairs(target)
    ref = _reference_loss(embeddings[n_pairs[:, 0]],
                          embeddings[n_pairs[:, 1]],
                          embeddings[n_negatives])
    np.testing.assert_allclose(np.asarray(loss), np.asarray(ref),
                               rtol=1e-5, atol=1e-5)

    print("KERNEL_OK")
</pallas_src>

<mosaic_0001>
module attributes {stable_mosaic.version = 11 : i64} {
  func.func @_npair_angular_kernel(%arg0: memref<4x32xf32, #tpu.memory_space<vmem>>, %arg1: memref<4x32xf32, #tpu.memory_space<vmem>>, %arg2: memref<1x1xf32, #tpu.memory_space<vmem>>) attributes {dimension_semantics = [], scalar_prefetch = 0 : i64, scratch_operands = 0 : i64, tpu.core_type = #tpu.core_type<tc>} {
    %c0 = arith.constant 0 : index
    %c0_0 = arith.constant 0 : index
    %0 = vector.load %arg0[%c0, %c0_0] : memref<4x32xf32, #tpu.memory_space<vmem>>, vector<4x32xf32>
    %c0_1 = arith.constant 0 : index
    %c0_2 = arith.constant 0 : index
    %1 = vector.load %arg1[%c0_1, %c0_2] : memref<4x32xf32, #tpu.memory_space<vmem>>, vector<4x32xf32>
    %cst = arith.constant dense<0.000000e+00> : vector<4x4xf32>
    %2 = tpu.matmul %0, %1, %cst {dimension_numbers = #tpu.dot_dimension_numbers<[1], [1], [0], [0], [0, 0, 1, 0], [], []>} : vector<4x32xf32>, vector<4x32xf32>, vector<4x4xf32> -> vector<4x4xf32>
    %3 = arith.addf %0, %1 : vector<4x32xf32>
    %cst_3 = arith.constant dense<0.000000e+00> : vector<4x4xf32>
    %4 = tpu.matmul %3, %1, %cst_3 {dimension_numbers = #tpu.dot_dimension_numbers<[1], [1], [0], [0], [0, 0, 1, 0], [], []>} : vector<4x32xf32>, vector<4x32xf32>, vector<4x4xf32> -> vector<4x4xf32>
    %5 = tpu.iota {dimensions = array<i32: 0>} : vector<4x4xi32>
    %6 = tpu.iota {dimensions = array<i32: 1>} : vector<4x4xi32>
    %7 = arith.cmpi eq, %5, %6 : vector<4x4xi32>
    %8 = arith.cmpi ne, %5, %6 : vector<4x4xi32>
    %cst_4 = arith.constant 0.000000e+00 : f32
    %9 = vector.broadcast %cst_4 : f32 to vector<4x4xf32>
    %10 = arith.select %7, %2, %9 : vector<4x4xi1>, vector<4x4xf32>
    %cst_5 = arith.constant dense<0.000000e+00> : vector<4xf32>
    %11 = vector.multi_reduction <add>, %10, %cst_5 [1] : vector<4x4xf32> to vector<4xf32>
    %12 = vector.shape_cast %11 : vector<4xf32> to vector<4x1xf32>
    %13 = vector.broadcast %12 : vector<4x1xf32> to vector<4x4xf32>
    %14 = arith.subf %2, %13 : vector<4x4xf32>
    %cst_6 = arith.constant 0xFF800000 : f32
    %15 = vector.broadcast %cst_6 : f32 to vector<4x4xf32>
    %16 = arith.select %8, %14, %15 : vector<4x4xi1>, vector<4x4xf32>
    %17 = math.exp %16 : vector<4x4xf32>
    %cst_7 = arith.constant dense<0.000000e+00> : vector<4xf32>
    %18 = vector.multi_reduction <add>, %17, %cst_7 [1] : vector<4x4xf32> to vector<4xf32>
    %19 = vector.shape_cast %18 : vector<4xf32> to vector<4x1xf32>
    %cst_8 = arith.constant 1.000000e+00 : f32
    %20 = vector.broadcast %cst_8 : f32 to vector<4x1xf32>
    %21 = arith.addf %20, %19 : vector<4x1xf32>
    %22 = math.log %21 : vector<4x1xf32>
    %23 = vector.shape_cast %22 : vector<4x1xf32> to vector<1x4x1xf32>
    %cst_9 = arith.constant dense<0.000000e+00> : vector<1xf32>
    %24 = vector.multi_reduction <add>, %23, %cst_9 [1, 2] : vector<1x4x1xf32> to vector<1xf32>
    %25 = vector.shape_cast %24 : vector<1xf32> to vector<1x1x1xf32>
    %26 = vector.extract %25[0, 0, 0] : f32 from vector<1x1x1xf32>
    %cst_10 = arith.constant 4.000000e+00 : f32
    %27 = arith.divf %26, %cst_10 : f32
    %cst_11 = arith.constant 4.000000e+00 : f32
    %28 = vector.broadcast %cst_11 : f32 to vector<4x4xf32>
    %29 = arith.mulf %28, %4 : vector<4x4xf32>
    %cst_12 = arith.constant 4.000000e+00 : f32
    %30 = vector.broadcast %cst_12 : f32 to vector<4x1xf32>
    %31 = arith.mulf %30, %12 : vector<4x1xf32>
    %32 = vector.broadcast %31 : vector<4x1xf32> to vector<4x4xf32>
    %33 = arith.subf %29, %32 : vector<4x4xf32>
    %cst_13 = arith.constant 0xFF800000 : f32
    %34 = vector.broadcast %cst_13 : f32 to vector<4x4xf32>
    %35 = arith.select %8, %33, %34 : vector<4x4xi1>, vector<4x4xf32>
    %cst_14 = arith.constant dense<0xFF800000> : vector<4xf32>
    %36 = vector.multi_reduction <maximumf>, %35, %cst_14 [1] : vector<4x4xf32> to vector<4xf32>
    %37 = vector.shape_cast %36 : vector<4xf32> to vector<4x1xf32>
    %38 = vector.broadcast %37 : vector<4x1xf32> to vector<4x4xf32>
    %39 = arith.subf %35, %38 : vector<4x4xf32>
    %40 = math.exp %39 : vector<4x4xf32>
    %cst_15 = arith.constant 0.000000e+00 : f32
    %41 = vector.broadcast %cst_15 : f32 to vector<4x1xf32>
    %42 = arith.subf %41, %37 : vector<4x1xf32>
    %43 = math.exp %42 : vector<4x1xf32>
    %cst_16 = arith.constant dense<0.000000e+00> : vector<4xf32>
    %44 = vector.multi_reduction <add>, %40, %cst_16 [1] : vector<4x4xf32> to vector<4xf32>
    %45 = vector.shape_cast %44 : vector<4xf32> to vector<4x1xf32>
    %46 = arith.addf %43, %45 : vector<4x1xf32>
    %47 = math.log %46 : vector<4x1xf32>
    %48 = arith.addf %37, %47 : vector<4x1xf32>
    %49 = vector.shape_cast %48 : vector<4x1xf32> to vector<1x4x1xf32>
    %cst_17 = arith.constant dense<0.000000e+00> : vector<1xf32>
    %50 = vector.multi_reduction <add>, %49, %cst_17 [1, 2] : vector<1x4x1xf32> to vector<1xf32>
    %51 = vector.shape_cast %50 : vector<1xf32> to vector<1x1x1xf32>
    %52 = vector.extract %51[0, 0, 0] : f32 from vector<1x1x1xf32>
    %cst_18 = arith.constant 4.000000e+00 : f32
    %53 = arith.divf %52, %cst_18 : f32
    %54 = arith.mulf %0, %0 : vector<4x32xf32>
    %55 = arith.mulf %1, %1 : vector<4x32xf32>
    %56 = arith.addf %54, %55 : vector<4x32xf32>
    %57 = vector.shape_cast %56 : vector<4x32xf32> to vector<1x4x32xf32>
    %cst_19 = arith.constant dense<0.000000e+00> : vector<1xf32>
    %58 = vector.multi_reduction <add>, %57, %cst_19 [1, 2] : vector<1x4x32xf32> to vector<1xf32>
    %59 = vector.shape_cast %58 : vector<1xf32> to vector<1x1x1xf32>
    %60 = vector.extract %59[0, 0, 0] : f32 from vector<1x1x1xf32>
    %cst_20 = arith.constant 4.000000e+00 : f32
    %61 = arith.divf %60, %cst_20 : f32
    %cst_21 = arith.constant 2.000000e+00 : f32
    %62 = arith.mulf %cst_21, %53 : f32
    %63 = arith.addf %27, %62 : f32
    %cst_22 = arith.constant 3.000000e+00 : f32
    %64 = arith.divf %63, %cst_22 : f32
    %cst_23 = arith.constant 2.000000e-02 : f32
    %65 = arith.mulf %cst_23, %61 : f32
    %66 = arith.addf %64, %65 : f32
    %67 = vector.broadcast %66 : f32 to vector<1x1xf32>
    %c0_24 = arith.constant 0 : index
    %c0_25 = arith.constant 0 : index
    %68 = vector.load %arg2[%c0_24, %c0_25] : memref<1x1xf32, #tpu.memory_space<vmem>>, vector<1x1xf32>
    tpu.vector_store %arg2[%c0_24, %c0_25], %67 {strides = array<i32>} : memref<1x1xf32, #tpu.memory_space<vmem>>, vector<1x1xf32>,
    return
  }
}

</mosaic_0001>

<bundles_post_ra>
// kernel: tpu_custom_call.1
= control target key start
LH: loop header
LB: loop body
LE: loop exit
PB: predicated region body
PF: predicated region fallthrough
CT: control target
= control target key end

     0   :  { %7 = vsyncpa [#allocation3], 0  ;;  %s471_s0 = inlined_call_operand.hbm [shape: f32[4,32], index: 0, kind: input, shape index: {}]   ;;  %s472_s1 = inlined_call_operand.hbm [shape: f32[4,32], index: 1, kind: input, shape index: {}]   ;;  %s473_s2 = inlined_call_operand.hbm [shape: f32[1,1], index: 2, kind: output, shape index: {}]  }
   0x1   :  { %8 = vsyncpa [#allocation6], 0 }
   0x2   :  { %9 = vsyncpa [#allocation4], 0  ;;  %s411_s9 = smov [#allocation2]   ;;  %s412_s11 = smov [#allocation5]  }
   0x3   :  { %s16_s10 = sshll.u32 %s411_s9, 4  ;;  %s26_s12 = sshll.u32 %s412_s11, 4  ;;  %s17_s10 = int_to_ptr.vmem [resolvable:$true] %s16_s10  ;;  %s27_s12 = int_to_ptr.vmem [resolvable:$true] %s26_s12 }
   0x4   :  { %s339_s15 = scalar_lea.hbm %s471_s0, 64 }
   0x5   :  { %p340_p0 = scmp.ne.s32.totalorder %s471_s0, %s339_s15  ;;  %p343_p1 = scmp.lt.u32.totalorder %s339_s15, %s471_s0 }
   0x7   :  { %p345_p2 = pnand %p343_p1, %p340_p0 }
   0x9   :  { %348 = shalt.err (!%p345_p2)
}
   0xa   :  { %s349_s20 = scalar_lea.vmem %s17_s10, 64  ;;  %p354_p4 = scmp.lt.s32.totalorder %s17_s10, %s17_s10 }
   0xb   :  { %p350_p3 = scmp.ne.s32.totalorder %s17_s10, %s349_s20  ;;  %p355_p5 = scmp.lt.s32.totalorder %s349_s20, %s349_s20 }
   0xd   :  { %p356_p6 = por %p355_p5, %p354_p4 }
   0xf   :  { %p357_p7 = pnand %p356_p6, %p350_p3 }
  0x11   :  { %360 = shalt.err (!%p357_p7)
}
  0x12   :  { %19 = dma.hbm_to_vmem [thread:$0]  %s471_s0, 64, %s17_s10, [#allocation3]  }
  0x13   :  { %s361_s25 = scalar_lea.hbm %s472_s1, 64 }
  0x14   :  { %p362_p8 = scmp.ne.s32.totalorder %s472_s1, %s361_s25  ;;  %p365_p9 = scmp.lt.u32.totalorder %s361_s25, %s472_s1 }
  0x16   :  { %p367_p10 = pnand %p365_p9, %p362_p8 }
  0x18   :  { %370 = shalt.err (!%p367_p10)
}
  0x19   :  { %s371_s30 = scalar_lea.vmem %s27_s12, 64  ;;  %p376_p12 = scmp.lt.s32.totalorder %s27_s12, %s27_s12 }
  0x1a   :  { %p372_p11 = scmp.ne.s32.totalorder %s27_s12, %s371_s30  ;;  %p377_p13 = scmp.lt.s32.totalorder %s371_s30, %s371_s30 }
  0x1c   :  { %p378_p0 = por %p377_p13, %p376_p12 }
  0x1e   :  { %p379_p1 = pnand %p378_p0, %p372_p11 }
  0x20   :  { %382 = shalt.err (!%p379_p1)
}
  0x21   :  { %29 = dma.hbm_to_vmem [thread:$0]  %s472_s1, 64, %s27_s12, [#allocation6]  }
  0x22   :  { %405 = dma.done.wait [#allocation3], 64  }
  0x23   :  { %406 = vsyncadd [#allocation3], 4294967232 }
  0x24   :  { %407 = dma.done.wait [#allocation6], 64  }
  0x25   :  { %408 = vsyncadd [#allocation6], 4294967232  ;;  %v413_v0 = vmov 0.0   ;;  %vm414_vm0 = vmmov 0   ;;  %vm38_vm1 = vcmask 261120   ;;  %v189_v4 = vlaneseq  ;;  %s415_s13 = smov [#allocation7]  }
  0x26   :  { %308 = vmatprep.subr.mxu0 %v413_v0  ;;  %310 = vmatprep.mubr.msk.f32.mxu0 %vm414_vm0, %v413_v0  ;;  %v37_v1 = vld [vmem:[#allocation5] sm:$0xf]  ;;  %v36_v2 = vld [vmem:[#allocation2] sm:$0xf]  ;;  %vm196_vm3 = vcmask 27648   ;;  %vm210_vm5 = vcmask 3072  }
  0x27   :  { %313 = vmatprep.subr.mxu1 %v413_v0  ;;  %315 = vmatprep.mubr.msk.f32.mxu1 %vm414_vm0, %v413_v0  ;;  %v115_v3 = vadd.f32 %v37_v1, %v36_v2  ;;  %v190_v5 = vshrl.u32 %v189_v4, 7  ;;  %v192_v6 = vand.u32 127, %v189_v4  ;;  %v257_v38 = vmul.f32 %v36_v2, %v36_v2  ;;  %s290_s14 = sshll.u32 %s415_s13, 4  ;;  %s291_s14 = int_to_ptr.vmem [resolvable:$true] %s290_s14 }
  0x28   :  { %309 = vmatpush3.xpose.msk.msra.mxu0 %vm38_vm1, %v37_v1  ;;  %314 = vmatpush3.xpose.msk.msra.mxu1 %vm38_vm1, %v37_v1  ;;  %v258_v39 = vmul.f32 %v37_v1, %v37_v1  ;;  %vm260_vm6 = vcmask 257024   ;;  %vm282_vm7 = vcmask 0   ;;  %s383_s16 = scalar_lea.vmem %s291_s14, 16  ;;  %s387_s17 = scalar_lea.vmem %s291_s14, 32 }
  0x29   :  { %vm193_vm2 = vcmp.eq.s32.totalorder %v190_v5, %v192_v6  ;;  %vm194_vm4 = vcmp.ne.s32.totalorder %v190_v5, %v192_v6  ;;  %p384_p2 = scmp.ne.s32.totalorder %s291_s14, %s383_s16  ;;  %p388_p3 = scmp.lt.s32.totalorder %s291_s14, %s291_s14 }
  0x2a   :  { %v259_v44 = vadd.f32 %v258_v39, %v257_v38  ;;  %p389_p4 = scmp.lt.s32.totalorder %s387_s17, %s383_s16 }
  0x2b   :  { %311 = vmatmul.mubr.msk.f32.vlgmr.msra.gmra.mrb[0].mxu0 %vm38_vm1, %v36_v2  ;;  %316 = vmatmul.mubr.msk.f32.vlgmr.msra.gmra.mrb[0].mxu1 %vm38_vm1, %v115_v3 }
  0x2c   :  { %v261_v46 = vsel %vm260_vm6, %v259_v44, 0.0  ;;  %p390_p5 = por %p389_p4, %p388_p3 }
  0x2e   :  { %p391_p6 = pnand %p390_p5, %p384_p2 }
  0xfe   :  { %v111_v7 = vpop.f32.mrb[0].mxu0  ;;  %v185_v8 = vpop.f32.mrb[0].mxu1 }
  0xff   :  { %v312_v9 = vpop.f32.mrb[1].mxu0  ;;  %v195_v10 = vsel %vm193_vm2, %v111_v7, 0.0  ;;  %v317_v11 = vpop.f32.mrb[1].mxu1  ;;  %v224_v13 = vmul.f32 4.0, %v185_v8 }
 0x100   :  { %v197_v12 = vsel %vm196_vm3, %v195_v10, 0.0 }
 0x101   :  { %198 = vadd.xlane.f32.xlu0 %v197_v12 }
 0x18e   :  { %v199_v14 = vpop.xlane.xlu0 %198 }
 0x18f   :  { %v200_v15 = vsub.f32 %v111_v7, %v199_v14  ;;  %v225_v16 = vmul.f32 4.0, %v199_v14 }
 0x191   :  { %v226_v17 = vsub.f32 %v224_v13, %v225_v16  ;;  %v201_v18 = vsel %vm194_vm4, %v200_v15, -inf }
 0x192   :  { %v202_v23 = vmul.f32 1.442695, %v201_v18 }
 0x193   :  { %v227_v19 = vsel %vm194_vm4, %v226_v17, -inf }
 0x194   :  { %v228_v20 = vsel %vm196_vm3, %v227_v19, -inf }
 0x195   :  { %229 = vmax.xlane.f32.xlu0 %v228_v20 }
 0x222   :  { %v230_v21 = vpop.xlane.xlu0 %229 }
 0x223   :  { %v231_v22 = vsub.f32 %v227_v19, %v230_v21  ;;  %v234_v29 = vsub.f32 0.0, %v230_v21 }
 0x225   :  { %v232_v24 = vmul.f32 1.442695, %v231_v22  ;;  %v235_v30 = vmul.f32 1.442695, %v234_v29 }
 0x227   :  { %329 = vpow2.f32 %v232_v24 }
 0x228   :  { %331 = vpow2.f32 %v202_v23 }
 0x229   :  { %333 = vpow2.f32 %v235_v30 }
 0x231   :  { %v330_v25 = vpop.eup %329 }
 0x232   :  { %v237_v26 = vsel %vm196_vm3, %v330_v25, 0.0  ;;  %v332_v27 = vpop.eup %331 }
 0x233   :  { %238 = vadd.xlane.f32.xlu1 %v237_v26  ;;  %v204_v28 = vsel %vm196_vm3, %v332_v27, 0.0  ;;  %v334_v31 = vpop.eup %333 }
 0x237   :  { %205 = vadd.xlane.f32.xlu1 %v204_v28 }
 0x2c0   :  { %v239_v32 = vpop.xlane.xlu1 %238 }
 0x2c1   :  { %v240_v33 = vadd.f32 %v334_v31, %v239_v32 }
 0x2c3   :  { %335 = vlog2.f32 %v240_v33 }
 0x2c4   :  { %v206_v34 = vpop.xlane.xlu1 %205 }
 0x2c5   :  { %v207_v35 = vadd.f32 1.0, %v206_v34 }
 0x2c7   :  { %337 = vlog2.f32 %v207_v35 }
 0x2cd   :  { %v336_v36 = vpop.eup %335 }
 0x2ce   :  { %v242_v37 = vmul.f32 0.6931472, %v336_v36 }
 0x2d0   :  { %v243_v40 = vadd.f32 %v242_v37, %v230_v21 }
 0x2d1   :  { %v338_v41 = vpop.eup %337 }
 0x2d2   :  { %v244_v42 = vsel %vm210_vm5, %v243_v40, 0.0  ;;  %v209_v43 = vmul.f32 0.6931472, %v338_v41 }
 0x2d3   :  { %245 = vadd.xlane.f32.xlu1 %v244_v42 }
 0x2d4   :  { %v211_v45 = vsel %vm210_vm5, %v209_v43, 0.0 }
 0x2d5   :  { %212 = vadd.xlane.f32.xlu0 %v211_v45 }
 0x2d9   :  { %262 = vadd.xlane.f32.xlu0 %v261_v46 }
 0x360   :  { %v246_v47 = vpop.xlane.xlu1 %245 }
 0x361   :  { %v247_v48 = vrot.slane %v246_v47, 4 }
 0x362   :  { %v213_v49 = vpop.xlane.xlu0 %212 }
 0x363   :  { %v248_v50 = vadd.f32 %v247_v48, %v246_v47  ;;  %v214_v51 = vrot.slane %v213_v49, 4 }
 0x365   :  { %v249_v52 = vrot.slane %v248_v50, 2  ;;  %v215_v53 = vadd.f32 %v214_v51, %v213_v49 }
 0x366   :  { %v263_v54 = vpop.xlane.xlu0 %262 }
 0x367   :  { %v250_v55 = vadd.f32 %v249_v52, %v248_v50  ;;  %v216_v56 = vrot.slane %v215_v53, 2  ;;  %v264_v57 = vrot.slane %v263_v54, 4 }
 0x369   :  { %v265_v58 = vadd.f32 %v264_v57, %v263_v54  ;;  %v217_v59 = vadd.f32 %v216_v56, %v215_v53  ;;  %v251_v60 = vrot.slane %v250_v55, 1 }
 0x36b   :  { %v266_v61 = vrot.slane %v265_v58, 2  ;;  %v218_v62 = vrot.slane %v217_v59, 1  ;;  %v252_v1 = vadd.f32 %v251_v60, %v250_v55 }
 0x36d   :  { %v267_v63 = vadd.f32 %v266_v61, %v265_v58  ;;  %v219_v0 = vadd.f32 %v218_v62, %v217_v59 }
 0x36f   :  { %318 = vpush %v219_v0  ;;  %v268_v2 = vrot.slane %v267_v63, 1 }
 0x370   :  { %320 = vpush %v252_v1 }
 0x371   :  { %v269_v3 = vadd.f32 %v268_v2, %v267_v63 }
 0x373   :  { %322 = vpush %v269_v3 }
 0x3a0   :  { %s319_s1 = spop %318 }
 0x3a1   :  { %s321_s4 = spop %320  ;;  %s223_s6 = smul.f32 0.25, %s319_s1 }
 0x3a2   :  { %s256_s5 = smul.f32 0.25, %s321_s4 }
 0x3a4   :  { %s274_s7 = smul.f32 2.0, %s256_s5  ;;  %s323_s8 = spop %322 }
 0x3a5   :  { %s273_s9 = smul.f32 0.25, %s323_s8 }
 0x3a6   :  { %s275_s10 = sadd.f32 %s274_s7, %s223_s6 }
 0x3a7   :  { %s279_s11 = smul.f32 0.02, %s273_s9 }
 0x3a8   :  { %s278_s12 = smul.f32 0.33333334, %s275_s10 }
 0x3aa   :  { %s280_s15 = sadd.f32 %s279_s11, %s278_s12 }
 0x3ac   :  { %v281_v4 = vstv %s280_s15 }
 0x3ad   :  { %283 = vst.msk [vmem:[#allocation7] sm:$0x1] %vm282_vm7, %v281_v4 }
 0x3ae   :  { %394 = shalt.err (!%p391_p6)
}
 0x3af   :  { %s395_s20 = scalar_lea.hbm %s473_s2, 16 }
 0x3b0   :  { %p396_p7 = scmp.ne.s32.totalorder %s473_s2, %s395_s20  ;;  %p399_p8 = scmp.lt.u32.totalorder %s395_s20, %s473_s2 }
 0x3b2   :  { %p401_p9 = pnand %p399_p8, %p396_p7 }
 0x3b4   :  { %404 = shalt.err (!%p401_p9)
}
 0x3b5   :  { %293 = dma.vmem_to_hbm [thread:$0]  %s291_s14, 16, %s473_s2, [#allocation4]  }
 0x3b6   :  { %409 = dma.done.wait [#allocation4], 16  }
 0x3b7   :  { %410 = vsyncadd [#allocation4], 4294967280 }
 0x3b8   :  { %297 = vsyncpa [#allocation3], 1 }
 0x3b9   :  { %298 = vsyncpa [#allocation6], 1 }
 0x3ba   :  { %299 = vsyncpa [#allocation4], 1 }

</bundles_post_ra>
